<compile_context>
chip_gen: v6e
topology: v6e:2x2x1
jax: 0.10.0
libtpu: 0.0.40
codegen_flags: <defaults>
</compile_context>

<pallas_src>
import functools

import jax
import jax.numpy as jnp
from jax.experimental import pallas as pl
from jax.experimental.pallas import tpu as pltpu


def _round_up(x, m):
    return (x + m - 1) // m * m


def _vmem_limit_bytes():
    """Per-generation VMEM budget: ~48 MiB on v7x (64 MiB physical), ~100 MiB
    on v5e/v6e (128 MiB physical)."""
    cap = 64 * 1024 * 1024  # conservative (v7x-sized) fallback
    try:
        cap = int(pltpu.get_tpu_info().vmem_capacity_bytes)
    except Exception:
        pass
    return max(16 * 1024 * 1024, min(cap - 16 * 1024 * 1024, 100 * 1024 * 1024))


def _token_tile_cap():
    """Token-tile cap: 256 on v5e (128x128 MXUs, 1 vst slot), 512 elsewhere."""
    try:
        kind = jax.devices()[0].device_kind.lower()
        if "v5 lite" in kind or "v5e" in kind or "v5lite" in kind:
            return 256
    except Exception:
        pass
    return 512


def _text_encoder_kernel(ids_ref,   # SMEM scalar prefetch: (T_pad,) int32
                         emb_hbm,   # HBM (pl.ANY): (V, H_pad) f32
                         w1_ref,    # VMEM: (H_pad, H_pad) bf16 (= W1^T, padded)
                         b1_ref,    # VMEM: (1, H_pad) f32
                         w2_ref,    # VMEM: (H_pad, H_pad) bf16 (= W2^T, padded)
                         b2_ref,    # VMEM: (1, H_pad) f32
                         out_ref,   # VMEM out tile: (tile_t, H_pad) f32
                         xbuf,      # VMEM scratch: (2, tile_t, H_pad) f32
                         sem):      # DMA semaphores: (2,)
    o = pl.program_id(0)            # "parallel" axis (split across TCs on v7x)
    i = pl.program_id(1)            # "arbitrary" axis (sequential per core)
    n_inner = pl.num_programs(1)
    tile_t = xbuf.shape[1]
    slot = i & 1

    def issue_gather(tile_idx, slot_idx):
        # Issue tile_t independent row DMAs (HBM -> VMEM) on sem[slot_idx].
        base = tile_idx * tile_t

        @pl.loop(0, tile_t // 8)
        def _(r8):
            # 8-wide manual unroll so descriptor issues pipeline on the
            # scalar/misc slots instead of serializing per row.
            for u in range(8):
                r = r8 * 8 + u
                tok = ids_ref[base + r]
                pltpu.make_async_copy(
                    emb_hbm.at[pl.ds(tok, 1), :],
                    xbuf.at[slot_idx, pl.ds(r, 1), :],
                    sem.at[slot_idx]).start()

    # Prime the pipeline at the start of each per-core inner sequence.
    @pl.when(i == 0)
    def _():
        issue_gather(o * n_inner, 0)

    # Prefetch the NEXT tile's rows into the other slot before blocking on
    # this tile, so the gather overlaps the two matmuls below.
    @pl.when(i + 1 < n_inner)
    def _():
        issue_gather(o * n_inner + i + 1, (i + 1) & 1)

    # ONE aggregate wait for all tile_t row copies of the current slot: only
    # the descriptor's byte count matters (tile_t * H_pad * 4), which equals
    # the sum of the individual row copies.
    agg_src = (emb_hbm.at[pl.ds(0, tile_t), :] if emb_hbm.shape[0] >= tile_t
               else xbuf.at[slot])
    pltpu.make_async_copy(agg_src, xbuf.at[slot], sem.at[slot]).wait()

    # MLP: relu(x @ W1^T + b1) @ W2^T + b2   (bf16 MXU inputs, f32 accum).
    x = xbuf[slot].astype(w1_ref.dtype)
    h = jnp.dot(x, w1_ref[...], preferred_element_type=jnp.float32) + b1_ref[...]
    h = jnp.maximum(h, 0.0)
    y = (jnp.dot(h.astype(w2_ref.dtype), w2_ref[...],
                 preferred_element_type=jnp.float32) + b2_ref[...])
    out_ref[...] = y.astype(out_ref.dtype)


def prepare_text_encoder_params(emb_table, w1, b1, w2, b2,
                                compute_dtype=jnp.bfloat16):
    """One-time parameter prep (pad / transpose / cast), hoisted out of the
    per-call forward so the kernel is the only per-call HBM consumer."""
    V, H = emb_table.shape
    H_pad = _round_up(H, 128)
    emb_p = emb_table.astype(jnp.float32)
    if H_pad != H:
        emb_p = jnp.pad(emb_p, ((0, 0), (0, H_pad - H)))
    # PyTorch Linear computes x @ W.T + b; pre-transpose and zero-pad weights.
    w1_p = jnp.zeros((H_pad, H_pad), compute_dtype).at[:H, :H].set(
        w1.T.astype(compute_dtype))
    w2_p = jnp.zeros((H_pad, H_pad), compute_dtype).at[:H, :H].set(
        w2.T.astype(compute_dtype))
    b1_p = jnp.zeros((1, H_pad), jnp.float32).at[0, :H].set(b1.astype(jnp.float32))
    b2_p = jnp.zeros((1, H_pad), jnp.float32).at[0, :H].set(b2.astype(jnp.float32))
    return dict(emb=emb_p, w1=w1_p, b1=b1_p, w2=w2_p, b2=b2_p)


@functools.partial(jax.jit, static_argnames=("hidden_size",))
def text_encoder_forward(input_text, params, *, hidden_size):
    """input_text: (B, S) int -> (B, S, hidden_size) float32."""
    B, S = input_text.shape
    V, H_pad = params["emb"].shape
    H = hidden_size
    T = B * S

    # Token-axis tiling: big lane/sublane-friendly tiles (amortize the
    # ~0.35us/step overhead); the toy problem collapses to a single step.
    tile_t = min(_token_tile_cap(), _round_up(T, 8))
    num_tiles = -(-T // tile_t)
    # Outer axis is "parallel" (split across TensorCores on v7x); inner axis
    # is "arbitrary" and carries the gather prefetch chain.  Only split when
    # each core still gets a >=2-deep prefetch pipeline.
    n_outer = 2 if num_tiles >= 4 else 1
    num_tiles = _round_up(num_tiles, n_outer)
    n_inner = num_tiles // n_outer
    T_pad = num_tiles * tile_t

    # Clamp ids so a bad token id can never become an OOB gather DMA; pad the
    # token axis with id 0 (padded rows are sliced off below).
    ids = jnp.clip(input_text.reshape(T).astype(jnp.int32), 0, V - 1)
    ids = jnp.zeros((T_pad,), jnp.int32).at[:T].set(ids)

    w_itemsize = jnp.dtype(params["w1"].dtype).itemsize
    cost = pl.CostEstimate(
        flops=2 * 2 * T_pad * H_pad * H_pad,           # two (T_pad,H_pad,H_pad) matmuls
        transcendentals=0,
        bytes_accessed=(T_pad * 4                       # token ids
                        + T_pad * H_pad * 4             # gathered embedding rows
                        + 2 * H_pad * H_pad * w_itemsize + 2 * H_pad * 4
                        + T_pad * H_pad * 4))           # output

    out = pl.pallas_call(
        _text_encoder_kernel,
        out_shape=jax.ShapeDtypeStruct((T_pad, H_pad), jnp.float32),
        grid_spec=pltpu.PrefetchScalarGridSpec(
            num_scalar_prefetch=1,                      # ids -> SMEM
            grid=(n_outer, n_inner),
            in_specs=[
                pl.BlockSpec(memory_space=pl.ANY),      # emb table stays in HBM
                # Grid-invariant weights/biases (double-buffered by default,
                # negligible at this H; for very large H_pad on v7x, tile
                # them along N or request single buffering instead).
                pl.BlockSpec((H_pad, H_pad), lambda o, i, _ids: (0, 0)),  # W1^T
                pl.BlockSpec((1, H_pad), lambda o, i, _ids: (0, 0)),      # b1
                pl.BlockSpec((H_pad, H_pad), lambda o, i, _ids: (0, 0)),  # W2^T
                pl.BlockSpec((1, H_pad), lambda o, i, _ids: (0, 0)),      # b2
            ],
            out_specs=pl.BlockSpec((tile_t, H_pad),
                                   lambda o, i, _ids: (o * n_inner + i, 0)),
            scratch_shapes=[
                pltpu.VMEM((2, tile_t, H_pad), jnp.float32),  # double-buffered gather
                pltpu.SemaphoreType.DMA((2,)),                # per-slot gather sems
            ]),
        compiler_params=pltpu.CompilerParams(
            dimension_semantics=("parallel", "arbitrary"),
            vmem_limit_bytes=_vmem_limit_bytes()),
        cost_estimate=cost,
    )(ids, params["emb"], params["w1"], params["b1"], params["w2"], params["b2"])

    return out[:T, :H].reshape(B, S, H)


def _reference_forward(input_text, emb_table, w1, b1, w2, b2, compute_dtype):
    x = emb_table[input_text].astype(compute_dtype)               # (B, S, H)
    h = jnp.dot(x, w1.T.astype(compute_dtype),
                preferred_element_type=jnp.float32) + b1
    h = jnp.maximum(h, 0.0)
    y = jnp.dot(h.astype(compute_dtype), w2.T.astype(compute_dtype),
                preferred_element_type=jnp.float32) + b2
    return y


def _run_case(key_ids, emb_table, w1, b1, w2, b2, batch, seq, hidden_size, vocab):
    params = prepare_text_encoder_params(emb_table, w1, b1, w2, b2)
    input_text = jax.random.randint(key_ids, (batch, seq), 0, vocab, dtype=jnp.int32)
    out = text_encoder_forward(input_text, params, hidden_size=hidden_size)
    out = jax.block_until_ready(out)

    ref_bf16 = _reference_forward(input_text, emb_table, w1, b1, w2, b2, jnp.bfloat16)
    ref_f32 = _reference_forward(input_text, emb_table, w1, b1, w2, b2, jnp.float32)
    assert out.shape == (batch, seq, hidden_size)
    assert jnp.allclose(out, ref_bf16, atol=2e-3, rtol=2e-3), "mismatch vs bf16 reference"
    assert jnp.allclose(out, ref_f32, atol=1e-1, rtol=1e-1), "mismatch vs f32 reference"


if __name__ == "__main__":
    hidden_size = 32
    key = jax.random.PRNGKey(0)
    (k_emb, k_w1, k_b1, k_w2, k_b2, k_ids,
     k_emb2, k_ids2) = jax.random.split(key, 8)

    # Case 1: small shapes consistent with the module (batch=2, seq=8,
    # vocab=64, hidden=32) -- single token tile, single grid step.
    vocab_size = 64
    emb_table = jax.random.normal(k_emb, (vocab_size, hidden_size), jnp.float32)
    w1 = jax.random.normal(k_w1, (hidden_size, hidden_size), jnp.float32) * 0.1
    b1 = jax.random.normal(k_b1, (hidden_size,), jnp.float32) * 0.1
    w2 = jax.random.normal(k_w2, (hidden_size, hidden_size), jnp.float32) * 0.1
    b2 = jax.random.normal(k_b2, (hidden_size,), jnp.float32) * 0.1
    _run_case(k_ids, emb_table, w1, b1, w2, b2,
              batch=2, seq=8, hidden_size=hidden_size, vocab=vocab_size)

    # Case 2: enough tokens (4*512) to exercise the multi-tile path: outer
    # "parallel" split plus the double-buffered gather prefetch chain.
    vocab2 = 2048
    emb_table2 = jax.random.normal(k_emb2, (vocab2, hidden_size), jnp.float32)
    _run_case(k_ids2, emb_table2, w1, b1, w2, b2,
              batch=4, seq=512, hidden_size=hidden_size, vocab=vocab2)

    print("KERNEL_OK")
</pallas_src>

<mosaic_0001>
module attributes {stable_mosaic.version = 11 : i64} {
  func.func @_text_encoder_kernel(%arg0: i32, %arg1: i32, %arg2: memref<16xi32, #tpu.memory_space<smem>>, %arg3: memref<64x128xf32, #tpu.memory_space<any>>, %arg4: memref<128x128xbf16, #tpu.memory_space<vmem>>, %arg5: memref<1x128xf32, #tpu.memory_space<vmem>>, %arg6: memref<128x128xbf16, #tpu.memory_space<vmem>>, %arg7: memref<1x128xf32, #tpu.memory_space<vmem>>, %arg8: memref<16x128xf32, #tpu.memory_space<vmem>>, %arg9: memref<2x16x128xf32, #tpu.memory_space<vmem>>, %arg10: memref<2x!tpu.dma_semaphore, #tpu.memory_space<semaphore_mem>>) attributes {dimension_semantics = [#tpu.dimension_semantics<parallel>, #tpu.dimension_semantics<arbitrary>], iteration_bounds = array<i64: 1, 1>, scalar_prefetch = 1 : i64, scratch_operands = 2 : i64, tpu.core_type = #tpu.core_type<tc>, window_params = [{}, {pipeline_mode = #tpu.pipeline_mode<synchronous>, transform_indices = @transform_1, window_bounds = array<i64: 128, 128>}, {pipeline_mode = #tpu.pipeline_mode<synchronous>, transform_indices = @transform_2, window_bounds = array<i64: 1, 128>}, {pipeline_mode = #tpu.pipeline_mode<synchronous>, transform_indices = @transform_3, window_bounds = array<i64: 128, 128>}, {pipeline_mode = #tpu.pipeline_mode<synchronous>, transform_indices = @transform_4, window_bounds = array<i64: 1, 128>}, {transform_indices = @transform_5, window_bounds = array<i64: 16, 128>}]} {
    %c1_i32 = arith.constant 1 : i32
    %0 = arith.andi %arg1, %c1_i32 : i32
    %c0_i32 = arith.constant 0 : i32
    %1 = arith.cmpi eq, %arg1, %c0_i32 : i32
    %2 = arith.extui %1 : i1 to i32
    %c0_i32_0 = arith.constant 0 : i32
    %3 = arith.cmpi ne, %2, %c0_i32_0 : i32
    scf.if %3 {
      %c1_i32_21 = arith.constant 1 : i32
      %31 = arith.muli %arg0, %c1_i32_21 : i32
      %c16_i32 = arith.constant 16 : i32
      %32 = arith.muli %31, %c16_i32 : i32
      %c0_i32_22 = arith.constant 0 : i32
      %c2_i32 = arith.constant 2 : i32
      %33 = arith.addi %c0_i32_22, %c2_i32 : i32
      %c1_i32_23 = arith.constant 1 : i32
      scf.for %arg11 = %c0_i32_22 to %33 step %c1_i32_23  : i32 {
        %c1_i32_25 = arith.constant 1 : i32
        %34 = arith.muli %arg11, %c1_i32_25 : i32
        %c0_i32_26 = arith.constant 0 : i32
        %35 = arith.addi %c0_i32_26, %34 : i32
        %c8_i32 = arith.constant 8 : i32
        %36 = arith.muli %35, %c8_i32 : i32
        %c0_i32_27 = arith.constant 0 : i32
        %37 = arith.addi %36, %c0_i32_27 : i32
        %38 = arith.addi %32, %37 : i32
        %39 = arith.index_cast %38 : i32 to index
        %40 = memref.load %arg2[%39] : memref<16xi32, #tpu.memory_space<smem>>
        %c0_i32_28 = arith.constant 0 : i32
        %c0_i32_29 = arith.constant 0 : i32
        %c0_i32_30 = arith.constant 0 : i32
        %41 = tpu.memref_slice %arg3[%40, %c0_i32_30] : memref<64x128xf32, #tpu.memory_space<any>> -> memref<1x128xf32, #tpu.memory_space<any>>
        %c0_i32_31 = arith.constant 0 : i32
        %42 = tpu.memref_slice %arg9[%c0_i32_28, %37, %c0_i32_31] : memref<2x16x128xf32, #tpu.memory_space<vmem>> -> memref<1x1x128xf32, #tpu.memory_space<vmem>>
        %43 = tpu.memref_squeeze %42 : memref<1x1x128xf32, #tpu.memory_space<vmem>> -> memref<1x128xf32, #tpu.memory_space<vmem>>
        %44 = tpu.memref_slice %arg10[%c0_i32_29] : memref<2x!tpu.dma_semaphore, #tpu.memory_space<semaphore_mem>> -> memref<1x!tpu.dma_semaphore, #tpu.memory_space<semaphore_mem>>
        %45 = tpu.memref_squeeze %44 : memref<1x!tpu.dma_semaphore, #tpu.memory_space<semaphore_mem>> -> memref<!tpu.dma_semaphore, #tpu.memory_space<semaphore_mem>>
        tpu.enqueue_dma source(%41 : memref<1x128xf32, #tpu.memory_space<any>>) target(%43 : memref<1x128xf32, #tpu.memory_space<vmem>>) target_semaphore(%45 : memref<!tpu.dma_semaphore, #tpu.memory_space<semaphore_mem>>)
        %c8_i32_32 = arith.constant 8 : i32
        %46 = arith.muli %35, %c8_i32_32 : i32
        %c1_i32_33 = arith.constant 1 : i32
        %47 = arith.addi %46, %c1_i32_33 : i32
        %48 = arith.addi %32, %47 : i32
        %49 = arith.index_cast %48 : i32 to index
        %50 = memref.load %arg2[%49] : memref<16xi32, #tpu.memory_space<smem>>
        %c0_i32_34 = arith.constant 0 : i32
        %c0_i32_35 = arith.constant 0 : i32
        %c0_i32_36 = arith.constant 0 : i32
        %51 = tpu.memref_slice %arg3[%50, %c0_i32_36] : memref<64x128xf32, #tpu.memory_space<any>> -> memref<1x128xf32, #tpu.memory_space<any>>
        %c0_i32_37 = arith.constant 0 : i32
        %52 = tpu.memref_slice %arg9[%c0_i32_34, %47, %c0_i32_37] : memref<2x16x128xf32, #tpu.memory_space<vmem>> -> memref<1x1x128xf32, #tpu.memory_space<vmem>>
        %53 = tpu.memref_squeeze %52 : memref<1x1x128xf32, #tpu.memory_space<vmem>> -> memref<1x128xf32, #tpu.memory_space<vmem>>
        %54 = tpu.memref_slice %arg10[%c0_i32_35] : memref<2x!tpu.dma_semaphore, #tpu.memory_space<semaphore_mem>> -> memref<1x!tpu.dma_semaphore, #tpu.memory_space<semaphore_mem>>
        %55 = tpu.memref_squeeze %54 : memref<1x!tpu.dma_semaphore, #tpu.memory_space<semaphore_mem>> -> memref<!tpu.dma_semaphore, #tpu.memory_space<semaphore_mem>>
        tpu.enqueue_dma source(%51 : memref<1x128xf32, #tpu.memory_space<any>>) target(%53 : memref<1x128xf32, #tpu.memory_space<vmem>>) target_semaphore(%55 : memref<!tpu.dma_semaphore, #tpu.memory_space<semaphore_mem>>)
        %c8_i32_38 = arith.constant 8 : i32
        %56 = arith.muli %35, %c8_i32_38 : i32
        %c2_i32_39 = arith.constant 2 : i32
        %57 = arith.addi %56, %c2_i32_39 : i32
        %58 = arith.addi %32, %57 : i32
        %59 = arith.index_cast %58 : i32 to index
        %60 = memref.load %arg2[%59] : memref<16xi32, #tpu.memory_space<smem>>
        %c0_i32_40 = arith.constant 0 : i32
        %c0_i32_41 = arith.constant 0 : i32
        %c0_i32_42 = arith.constant 0 : i32
        %61 = tpu.memref_slice %arg3[%60, %c0_i32_42] : memref<64x128xf32, #tpu.memory_space<any>> -> memref<1x128xf32, #tpu.memory_space<any>>
        %c0_i32_43 = arith.constant 0 : i32
        %62 = tpu.memref_slice %arg9[%c0_i32_40, %57, %c0_i32_43] : memref<2x16x128xf32, #tpu.memory_space<vmem>> -> memref<1x1x128xf32, #tpu.memory_space<vmem>>
        %63 = tpu.memref_squeeze %62 : memref<1x1x128xf32, #tpu.memory_space<vmem>> -> memref<1x128xf32, #tpu.memory_space<vmem>>
        %64 = tpu.memref_slice %arg10[%c0_i32_41] : memref<2x!tpu.dma_semaphore, #tpu.memory_space<semaphore_mem>> -> memref<1x!tpu.dma_semaphore, #tpu.memory_space<semaphore_mem>>
        %65 = tpu.memref_squeeze %64 : memref<1x!tpu.dma_semaphore, #tpu.memory_space<semaphore_mem>> -> memref<!tpu.dma_semaphore, #tpu.memory_space<semaphore_mem>>
        tpu.enqueue_dma source(%61 : memref<1x128xf32, #tpu.memory_space<any>>) target(%63 : memref<1x128xf32, #tpu.memory_space<vmem>>) target_semaphore(%65 : memref<!tpu.dma_semaphore, #tpu.memory_space<semaphore_mem>>)
        %c8_i32_44 = arith.constant 8 : i32
        %66 = arith.muli %35, %c8_i32_44 : i32
        %c3_i32 = arith.constant 3 : i32
        %67 = arith.addi %66, %c3_i32 : i32
        %68 = arith.addi %32, %67 : i32
        %69 = arith.index_cast %68 : i32 to index
        %70 = memref.load %arg2[%69] : memref<16xi32, #tpu.memory_space<smem>>
        %c0_i32_45 = arith.constant 0 : i32
        %c0_i32_46 = arith.constant 0 : i32
        %c0_i32_47 = arith.constant 0 : i32
        %71 = tpu.memref_slice %arg3[%70, %c0_i32_47] : memref<64x128xf32, #tpu.memory_space<any>> -> memref<1x128xf32, #tpu.memory_space<any>>
        %c0_i32_48 = arith.constant 0 : i32
        %72 = tpu.memref_slice %arg9[%c0_i32_45, %67, %c0_i32_48] : memref<2x16x128xf32, #tpu.memory_space<vmem>> -> memref<1x1x128xf32, #tpu.memory_space<vmem>>
        %73 = tpu.memref_squeeze %72 : memref<1x1x128xf32, #tpu.memory_space<vmem>> -> memref<1x128xf32, #tpu.memory_space<vmem>>
        %74 = tpu.memref_slice %arg10[%c0_i32_46] : memref<2x!tpu.dma_semaphore, #tpu.memory_space<semaphore_mem>> -> memref<1x!tpu.dma_semaphore, #tpu.memory_space<semaphore_mem>>
        %75 = tpu.memref_squeeze %74 : memref<1x!tpu.dma_semaphore, #tpu.memory_space<semaphore_mem>> -> memref<!tpu.dma_semaphore, #tpu.memory_space<semaphore_mem>>
        tpu.enqueue_dma source(%71 : memref<1x128xf32, #tpu.memory_space<any>>) target(%73 : memref<1x128xf32, #tpu.memory_space<vmem>>) target_semaphore(%75 : memref<!tpu.dma_semaphore, #tpu.memory_space<semaphore_mem>>)
        %c8_i32_49 = arith.constant 8 : i32
        %76 = arith.muli %35, %c8_i32_49 : i32
        %c4_i32 = arith.constant 4 : i32
        %77 = arith.addi %76, %c4_i32 : i32
        %78 = arith.addi %32, %77 : i32
        %79 = arith.index_cast %78 : i32 to index
        %80 = memref.load %arg2[%79] : memref<16xi32, #tpu.memory_space<smem>>
        %c0_i32_50 = arith.constant 0 : i32
        %c0_i32_51 = arith.constant 0 : i32
        %c0_i32_52 = arith.constant 0 : i32
        %81 = tpu.memref_slice %arg3[%80, %c0_i32_52] : memref<64x128xf32, #tpu.memory_space<any>> -> memref<1x128xf32, #tpu.memory_space<any>>
        %c0_i32_53 = arith.constant 0 : i32
        %82 = tpu.memref_slice %arg9[%c0_i32_50, %77, %c0_i32_53] : memref<2x16x128xf32, #tpu.memory_space<vmem>> -> memref<1x1x128xf32, #tpu.memory_space<vmem>>
        %83 = tpu.memref_squeeze %82 : memref<1x1x128xf32, #tpu.memory_space<vmem>> -> memref<1x128xf32, #tpu.memory_space<vmem>>
        %84 = tpu.memref_slice %arg10[%c0_i32_51] : memref<2x!tpu.dma_semaphore, #tpu.memory_space<semaphore_mem>> -> memref<1x!tpu.dma_semaphore, #tpu.memory_space<semaphore_mem>>
        %85 = tpu.memref_squeeze %84 : memref<1x!tpu.dma_semaphore, #tpu.memory_space<semaphore_mem>> -> memref<!tpu.dma_semaphore, #tpu.memory_space<semaphore_mem>>
        tpu.enqueue_dma source(%81 : memref<1x128xf32, #tpu.memory_space<any>>) target(%83 : memref<1x128xf32, #tpu.memory_space<vmem>>) target_semaphore(%85 : memref<!tpu.dma_semaphore, #tpu.memory_space<semaphore_mem>>)
        %c8_i32_54 = arith.constant 8 : i32
        %86 = arith.muli %35, %c8_i32_54 : i32
        %c5_i32 = arith.constant 5 : i32
        %87 = arith.addi %86, %c5_i32 : i32
        %88 = arith.addi %32, %87 : i32
        %89 = arith.index_cast %88 : i32 to index
        %90 = memref.load %arg2[%89] : memref<16xi32, #tpu.memory_space<smem>>
        %c0_i32_55 = arith.constant 0 : i32
        %c0_i32_56 = arith.constant 0 : i32
        %c0_i32_57 = arith.constant 0 : i32
        %91 = tpu.memref_slice %arg3[%90, %c0_i32_57] : memref<64x128xf32, #tpu.memory_space<any>> -> memref<1x128xf32, #tpu.memory_space<any>>
        %c0_i32_58 = arith.constant 0 : i32
        %92 = tpu.memref_slice %arg9[%c0_i32_55, %87, %c0_i32_58] : memref<2x16x128xf32, #tpu.memory_space<vmem>> -> memref<1x1x128xf32, #tpu.memory_space<vmem>>
        %93 = tpu.memref_squeeze %92 : memref<1x1x128xf32, #tpu.memory_space<vmem>> -> memref<1x128xf32, #tpu.memory_space<vmem>>
        %94 = tpu.memref_slice %arg10[%c0_i32_56] : memref<2x!tpu.dma_semaphore, #tpu.memory_space<semaphore_mem>> -> memref<1x!tpu.dma_semaphore, #tpu.memory_space<semaphore_mem>>
        %95 = tpu.memref_squeeze %94 : memref<1x!tpu.dma_semaphore, #tpu.memory_space<semaphore_mem>> -> memref<!tpu.dma_semaphore, #tpu.memory_space<semaphore_mem>>
        tpu.enqueue_dma source(%91 : memref<1x128xf32, #tpu.memory_space<any>>) target(%93 : memref<1x128xf32, #tpu.memory_space<vmem>>) target_semaphore(%95 : memref<!tpu.dma_semaphore, #tpu.memory_space<semaphore_mem>>)
        %c8_i32_59 = arith.constant 8 : i32
        %96 = arith.muli %35, %c8_i32_59 : i32
        %c6_i32 = arith.constant 6 : i32
        %97 = arith.addi %96, %c6_i32 : i32
        %98 = arith.addi %32, %97 : i32
        %99 = arith.index_cast %98 : i32 to index
        %100 = memref.load %arg2[%99] : memref<16xi32, #tpu.memory_space<smem>>
        %c0_i32_60 = arith.constant 0 : i32
        %c0_i32_61 = arith.constant 0 : i32
        %c0_i32_62 = arith.constant 0 : i32
        %101 = tpu.memref_slice %arg3[%100, %c0_i32_62] : memref<64x128xf32, #tpu.memory_space<any>> -> memref<1x128xf32, #tpu.memory_space<any>>
        %c0_i32_63 = arith.constant 0 : i32
        %102 = tpu.memref_slice %arg9[%c0_i32_60, %97, %c0_i32_63] : memref<2x16x128xf32, #tpu.memory_space<vmem>> -> memref<1x1x128xf32, #tpu.memory_space<vmem>>
        %103 = tpu.memref_squeeze %102 : memref<1x1x128xf32, #tpu.memory_space<vmem>> -> memref<1x128xf32, #tpu.memory_space<vmem>>
        %104 = tpu.memref_slice %arg10[%c0_i32_61] : memref<2x!tpu.dma_semaphore, #tpu.memory_space<semaphore_mem>> -> memref<1x!tpu.dma_semaphore, #tpu.memory_space<semaphore_mem>>
        %105 = tpu.memref_squeeze %104 : memref<1x!tpu.dma_semaphore, #tpu.memory_space<semaphore_mem>> -> memref<!tpu.dma_semaphore, #tpu.memory_space<semaphore_mem>>
        tpu.enqueue_dma source(%101 : memref<1x128xf32, #tpu.memory_space<any>>) target(%103 : memref<1x128xf32, #tpu.memory_space<vmem>>) target_semaphore(%105 : memref<!tpu.dma_semaphore, #tpu.memory_space<semaphore_mem>>)
        %c8_i32_64 = arith.constant 8 : i32
        %106 = arith.muli %35, %c8_i32_64 : i32
        %c7_i32 = arith.constant 7 : i32
        %107 = arith.addi %106, %c7_i32 : i32
        %108 = arith.addi %32, %107 : i32
        %109 = arith.index_cast %108 : i32 to index
        %110 = memref.load %arg2[%109] : memref<16xi32, #tpu.memory_space<smem>>
        %c0_i32_65 = arith.constant 0 : i32
        %c0_i32_66 = arith.constant 0 : i32
        %c0_i32_67 = arith.constant 0 : i32
        %111 = tpu.memref_slice %arg3[%110, %c0_i32_67] : memref<64x128xf32, #tpu.memory_space<any>> -> memref<1x128xf32, #tpu.memory_space<any>>
        %c0_i32_68 = arith.constant 0 : i32
        %112 = tpu.memref_slice %arg9[%c0_i32_65, %107, %c0_i32_68] : memref<2x16x128xf32, #tpu.memory_space<vmem>> -> memref<1x1x128xf32, #tpu.memory_space<vmem>>
        %113 = tpu.memref_squeeze %112 : memref<1x1x128xf32, #tpu.memory_space<vmem>> -> memref<1x128xf32, #tpu.memory_space<vmem>>
        %114 = tpu.memref_slice %arg10[%c0_i32_66] : memref<2x!tpu.dma_semaphore, #tpu.memory_space<semaphore_mem>> -> memref<1x!tpu.dma_semaphore, #tpu.memory_space<semaphore_mem>>
        %115 = tpu.memref_squeeze %114 : memref<1x!tpu.dma_semaphore, #tpu.memory_space<semaphore_mem>> -> memref<!tpu.dma_semaphore, #tpu.memory_space<semaphore_mem>>
        tpu.enqueue_dma source(%111 : memref<1x128xf32, #tpu.memory_space<any>>) target(%113 : memref<1x128xf32, #tpu.memory_space<vmem>>) target_semaphore(%115 : memref<!tpu.dma_semaphore, #tpu.memory_space<semaphore_mem>>)
      }
      %c2_i32_24 = arith.constant 2 : i32
    } else {
    }
    %c1_i32_1 = arith.constant 1 : i32
    %4 = arith.addi %arg1, %c1_i32_1 : i32
    %c1_i32_2 = arith.constant 1 : i32
    %5 = arith.cmpi slt, %4, %c1_i32_2 : i32
    %6 = arith.extui %5 : i1 to i32
    %c0_i32_3 = arith.constant 0 : i32
    %7 = arith.cmpi ne, %6, %c0_i32_3 : i32
    scf.if %7 {
      %c1_i32_21 = arith.constant 1 : i32
      %31 = arith.muli %arg0, %c1_i32_21 : i32
      %32 = arith.addi %31, %arg1 : i32
      %c1_i32_22 = arith.constant 1 : i32
      %33 = arith.addi %32, %c1_i32_22 : i32
      %c1_i32_23 = arith.constant 1 : i32
      %34 = arith.addi %arg1, %c1_i32_23 : i32
      %c1_i32_24 = arith.constant 1 : i32
      %35 = arith.andi %34, %c1_i32_24 : i32
      %c16_i32 = arith.constant 16 : i32
      %36 = arith.muli %33, %c16_i32 : i32
      %c0_i32_25 = arith.constant 0 : i32
      %c2_i32 = arith.constant 2 : i32
      %37 = arith.addi %c0_i32_25, %c2_i32 : i32
      %c1_i32_26 = arith.constant 1 : i32
      scf.for %arg11 = %c0_i32_25 to %37 step %c1_i32_26  : i32 {
        %c1_i32_28 = arith.constant 1 : i32
        %38 = arith.muli %arg11, %c1_i32_28 : i32
        %c0_i32_29 = arith.constant 0 : i32
        %39 = arith.addi %c0_i32_29, %38 : i32
        %c8_i32 = arith.constant 8 : i32
        %40 = arith.muli %39, %c8_i32 : i32
        %c0_i32_30 = arith.constant 0 : i32
        %41 = arith.addi %40, %c0_i32_30 : i32
        %42 = arith.addi %36, %41 : i32
        %43 = arith.index_cast %42 : i32 to index
        %44 = memref.load %arg2[%43] : memref<16xi32, #tpu.memory_space<smem>>
        %c0_i32_31 = arith.constant 0 : i32
        %45 = tpu.memref_slice %arg3[%44, %c0_i32_31] : memref<64x128xf32, #tpu.memory_space<any>> -> memref<1x128xf32, #tpu.memory_space<any>>
        %c0_i32_32 = arith.constant 0 : i32
        %46 = tpu.memref_slice %arg9[%35, %41, %c0_i32_32] : memref<2x16x128xf32, #tpu.memory_space<vmem>> -> memref<1x1x128xf32, #tpu.memory_space<vmem>>
        %47 = tpu.memref_squeeze %46 : memref<1x1x128xf32, #tpu.memory_space<vmem>> -> memref<1x128xf32, #tpu.memory_space<vmem>>
        %48 = tpu.memref_slice %arg10[%35] : memref<2x!tpu.dma_semaphore, #tpu.memory_space<semaphore_mem>> -> memref<1x!tpu.dma_semaphore, #tpu.memory_space<semaphore_mem>>
        %49 = tpu.memref_squeeze %48 : memref<1x!tpu.dma_semaphore, #tpu.memory_space<semaphore_mem>> -> memref<!tpu.dma_semaphore, #tpu.memory_space<semaphore_mem>>
        tpu.enqueue_dma source(%45 : memref<1x128xf32, #tpu.memory_space<any>>) target(%47 : memref<1x128xf32, #tpu.memory_space<vmem>>) target_semaphore(%49 : memref<!tpu.dma_semaphore, #tpu.memory_space<semaphore_mem>>)
        %c8_i32_33 = arith.constant 8 : i32
        %50 = arith.muli %39, %c8_i32_33 : i32
        %c1_i32_34 = arith.constant 1 : i32
        %51 = arith.addi %50, %c1_i32_34 : i32
        %52 = arith.addi %36, %51 : i32
        %53 = arith.index_cast %52 : i32 to index
        %54 = memref.load %arg2[%53] : memref<16xi32, #tpu.memory_space<smem>>
        %c0_i32_35 = arith.constant 0 : i32
        %55 = tpu.memref_slice %arg3[%54, %c0_i32_35] : memref<64x128xf32, #tpu.memory_space<any>> -> memref<1x128xf32, #tpu.memory_space<any>>
        %c0_i32_36 = arith.constant 0 : i32
        %56 = tpu.memref_slice %arg9[%35, %51, %c0_i32_36] : memref<2x16x128xf32, #tpu.memory_space<vmem>> -> memref<1x1x128xf32, #tpu.memory_space<vmem>>
        %57 = tpu.memref_squeeze %56 : memref<1x1x128xf32, #tpu.memory_space<vmem>> -> memref<1x128xf32, #tpu.memory_space<vmem>>
        %58 = tpu.memref_slice %arg10[%35] : memref<2x!tpu.dma_semaphore, #tpu.memory_space<semaphore_mem>> -> memref<1x!tpu.dma_semaphore, #tpu.memory_space<semaphore_mem>>
        %59 = tpu.memref_squeeze %58 : memref<1x!tpu.dma_semaphore, #tpu.memory_space<semaphore_mem>> -> memref<!tpu.dma_semaphore, #tpu.memory_space<semaphore_mem>>
        tpu.enqueue_dma source(%55 : memref<1x128xf32, #tpu.memory_space<any>>) target(%57 : memref<1x128xf32, #tpu.memory_space<vmem>>) target_semaphore(%59 : memref<!tpu.dma_semaphore, #tpu.memory_space<semaphore_mem>>)
        %c8_i32_37 = arith.constant 8 : i32
        %60 = arith.muli %39, %c8_i32_37 : i32
        %c2_i32_38 = arith.constant 2 : i32
        %61 = arith.addi %60, %c2_i32_38 : i32
        %62 = arith.addi %36, %61 : i32
        %63 = arith.index_cast %62 : i32 to index
        %64 = memref.load %arg2[%63] : memref<16xi32, #tpu.memory_space<smem>>
        %c0_i32_39 = arith.constant 0 : i32
        %65 = tpu.memref_slice %arg3[%64, %c0_i32_39] : memref<64x128xf32, #tpu.memory_space<any>> -> memref<1x128xf32, #tpu.memory_space<any>>
        %c0_i32_40 = arith.constant 0 : i32
        %66 = tpu.memref_slice %arg9[%35, %61, %c0_i32_40] : memref<2x16x128xf32, #tpu.memory_space<vmem>> -> memref<1x1x128xf32, #tpu.memory_space<vmem>>
        %67 = tpu.memref_squeeze %66 : memref<1x1x128xf32, #tpu.memory_space<vmem>> -> memref<1x128xf32, #tpu.memory_space<vmem>>
        %68 = tpu.memref_slice %arg10[%35] : memref<2x!tpu.dma_semaphore, #tpu.memory_space<semaphore_mem>> -> memref<1x!tpu.dma_semaphore, #tpu.memory_space<semaphore_mem>>
        %69 = tpu.memref_squeeze %68 : memref<1x!tpu.dma_semaphore, #tpu.memory_space<semaphore_mem>> -> memref<!tpu.dma_semaphore, #tpu.memory_space<semaphore_mem>>
        tpu.enqueue_dma source(%65 : memref<1x128xf32, #tpu.memory_space<any>>) target(%67 : memref<1x128xf32, #tpu.memory_space<vmem>>) target_semaphore(%69 : memref<!tpu.dma_semaphore, #tpu.memory_space<semaphore_mem>>)
        %c8_i32_41 = arith.constant 8 : i32
        %70 = arith.muli %39, %c8_i32_41 : i32
        %c3_i32 = arith.constant 3 : i32
        %71 = arith.addi %70, %c3_i32 : i32
        %72 = arith.addi %36, %71 : i32
        %73 = arith.index_cast %72 : i32 to index
        %74 = memref.load %arg2[%73] : memref<16xi32, #tpu.memory_space<smem>>
        %c0_i32_42 = arith.constant 0 : i32
        %75 = tpu.memref_slice %arg3[%74, %c0_i32_42] : memref<64x128xf32, #tpu.memory_space<any>> -> memref<1x128xf32, #tpu.memory_space<any>>
        %c0_i32_43 = arith.constant 0 : i32
        %76 = tpu.memref_slice %arg9[%35, %71, %c0_i32_43] : memref<2x16x128xf32, #tpu.memory_space<vmem>> -> memref<1x1x128xf32, #tpu.memory_space<vmem>>
        %77 = tpu.memref_squeeze %76 : memref<1x1x128xf32, #tpu.memory_space<vmem>> -> memref<1x128xf32, #tpu.memory_space<vmem>>
        %78 = tpu.memref_slice %arg10[%35] : memref<2x!tpu.dma_semaphore, #tpu.memory_space<semaphore_mem>> -> memref<1x!tpu.dma_semaphore, #tpu.memory_space<semaphore_mem>>
        %79 = tpu.memref_squeeze %78 : memref<1x!tpu.dma_semaphore, #tpu.memory_space<semaphore_mem>> -> memref<!tpu.dma_semaphore, #tpu.memory_space<semaphore_mem>>
        tpu.enqueue_dma source(%75 : memref<1x128xf32, #tpu.memory_space<any>>) target(%77 : memref<1x128xf32, #tpu.memory_space<vmem>>) target_semaphore(%79 : memref<!tpu.dma_semaphore, #tpu.memory_space<semaphore_mem>>)
        %c8_i32_44 = arith.constant 8 : i32
        %80 = arith.muli %39, %c8_i32_44 : i32
        %c4_i32 = arith.constant 4 : i32
        %81 = arith.addi %80, %c4_i32 : i32
        %82 = arith.addi %36, %81 : i32
        %83 = arith.index_cast %82 : i32 to index
        %84 = memref.load %arg2[%83] : memref<16xi32, #tpu.memory_space<smem>>
        %c0_i32_45 = arith.constant 0 : i32
        %85 = tpu.memref_slice %arg3[%84, %c0_i32_45] : memref<64x128xf32, #tpu.memory_space<any>> -> memref<1x128xf32, #tpu.memory_space<any>>
        %c0_i32_46 = arith.constant 0 : i32
        %86 = tpu.memref_slice %arg9[%35, %81, %c0_i32_46] : memref<2x16x128xf32, #tpu.memory_space<vmem>> -> memref<1x1x128xf32, #tpu.memory_space<vmem>>
        %87 = tpu.memref_squeeze %86 : memref<1x1x128xf32, #tpu.memory_space<vmem>> -> memref<1x128xf32, #tpu.memory_space<vmem>>
        %88 = tpu.memref_slice %arg10[%35] : memref<2x!tpu.dma_semaphore, #tpu.memory_space<semaphore_mem>> -> memref<1x!tpu.dma_semaphore, #tpu.memory_space<semaphore_mem>>
        %89 = tpu.memref_squeeze %88 : memref<1x!tpu.dma_semaphore, #tpu.memory_space<semaphore_mem>> -> memref<!tpu.dma_semaphore, #tpu.memory_space<semaphore_mem>>
        tpu.enqueue_dma source(%85 : memref<1x128xf32, #tpu.memory_space<any>>) target(%87 : memref<1x128xf32, #tpu.memory_space<vmem>>) target_semaphore(%89 : memref<!tpu.dma_semaphore, #tpu.memory_space<semaphore_mem>>)
        %c8_i32_47 = arith.constant 8 : i32
        %90 = arith.muli %39, %c8_i32_47 : i32
        %c5_i32 = arith.constant 5 : i32
        %91 = arith.addi %90, %c5_i32 : i32
        %92 = arith.addi %36, %91 : i32
        %93 = arith.index_cast %92 : i32 to index
        %94 = memref.load %arg2[%93] : memref<16xi32, #tpu.memory_space<smem>>
        %c0_i32_48 = arith.constant 0 : i32
        %95 = tpu.memref_slice %arg3[%94, %c0_i32_48] : memref<64x128xf32, #tpu.memory_space<any>> -> memref<1x128xf32, #tpu.memory_space<any>>
        %c0_i32_49 = arith.constant 0 : i32
        %96 = tpu.memref_slice %arg9[%35, %91, %c0_i32_49] : memref<2x16x128xf32, #tpu.memory_space<vmem>> -> memref<1x1x128xf32, #tpu.memory_space<vmem>>
        %97 = tpu.memref_squeeze %96 : memref<1x1x128xf32, #tpu.memory_space<vmem>> -> memref<1x128xf32, #tpu.memory_space<vmem>>
        %98 = tpu.memref_slice %arg10[%35] : memref<2x!tpu.dma_semaphore, #tpu.memory_space<semaphore_mem>> -> memref<1x!tpu.dma_semaphore, #tpu.memory_space<semaphore_mem>>
        %99 = tpu.memref_squeeze %98 : memref<1x!tpu.dma_semaphore, #tpu.memory_space<semaphore_mem>> -> memref<!tpu.dma_semaphore, #tpu.memory_space<semaphore_mem>>
        tpu.enqueue_dma source(%95 : memref<1x128xf32, #tpu.memory_space<any>>) target(%97 : memref<1x128xf32, #tpu.memory_space<vmem>>) target_semaphore(%99 : memref<!tpu.dma_semaphore, #tpu.memory_space<semaphore_mem>>)
        %c8_i32_50 = arith.constant 8 : i32
        %100 = arith.muli %39, %c8_i32_50 : i32
        %c6_i32 = arith.constant 6 : i32
        %101 = arith.addi %100, %c6_i32 : i32
        %102 = arith.addi %36, %101 : i32
        %103 = arith.index_cast %102 : i32 to index
        %104 = memref.load %arg2[%103] : memref<16xi32, #tpu.memory_space<smem>>
        %c0_i32_51 = arith.constant 0 : i32
        %105 = tpu.memref_slice %arg3[%104, %c0_i32_51] : memref<64x128xf32, #tpu.memory_space<any>> -> memref<1x128xf32, #tpu.memory_space<any>>
        %c0_i32_52 = arith.constant 0 : i32
        %106 = tpu.memref_slice %arg9[%35, %101, %c0_i32_52] : memref<2x16x128xf32, #tpu.memory_space<vmem>> -> memref<1x1x128xf32, #tpu.memory_space<vmem>>
        %107 = tpu.memref_squeeze %106 : memref<1x1x128xf32, #tpu.memory_space<vmem>> -> memref<1x128xf32, #tpu.memory_space<vmem>>
        %108 = tpu.memref_slice %arg10[%35] : memref<2x!tpu.dma_semaphore, #tpu.memory_space<semaphore_mem>> -> memref<1x!tpu.dma_semaphore, #tpu.memory_space<semaphore_mem>>
        %109 = tpu.memref_squeeze %108 : memref<1x!tpu.dma_semaphore, #tpu.memory_space<semaphore_mem>> -> memref<!tpu.dma_semaphore, #tpu.memory_space<semaphore_mem>>
        tpu.enqueue_dma source(%105 : memref<1x128xf32, #tpu.memory_space<any>>) target(%107 : memref<1x128xf32, #tpu.memory_space<vmem>>) target_semaphore(%109 : memref<!tpu.dma_semaphore, #tpu.memory_space<semaphore_mem>>)
        %c8_i32_53 = arith.constant 8 : i32
        %110 = arith.muli %39, %c8_i32_53 : i32
        %c7_i32 = arith.constant 7 : i32
        %111 = arith.addi %110, %c7_i32 : i32
        %112 = arith.addi %36, %111 : i32
        %113 = arith.index_cast %112 : i32 to index
        %114 = memref.load %arg2[%113] : memref<16xi32, #tpu.memory_space<smem>>
        %c0_i32_54 = arith.constant 0 : i32
        %115 = tpu.memref_slice %arg3[%114, %c0_i32_54] : memref<64x128xf32, #tpu.memory_space<any>> -> memref<1x128xf32, #tpu.memory_space<any>>
        %c0_i32_55 = arith.constant 0 : i32
        %116 = tpu.memref_slice %arg9[%35, %111, %c0_i32_55] : memref<2x16x128xf32, #tpu.memory_space<vmem>> -> memref<1x1x128xf32, #tpu.memory_space<vmem>>
        %117 = tpu.memref_squeeze %116 : memref<1x1x128xf32, #tpu.memory_space<vmem>> -> memref<1x128xf32, #tpu.memory_space<vmem>>
        %118 = tpu.memref_slice %arg10[%35] : memref<2x!tpu.dma_semaphore, #tpu.memory_space<semaphore_mem>> -> memref<1x!tpu.dma_semaphore, #tpu.memory_space<semaphore_mem>>
        %119 = tpu.memref_squeeze %118 : memref<1x!tpu.dma_semaphore, #tpu.memory_space<semaphore_mem>> -> memref<!tpu.dma_semaphore, #tpu.memory_space<semaphore_mem>>
        tpu.enqueue_dma source(%115 : memref<1x128xf32, #tpu.memory_space<any>>) target(%117 : memref<1x128xf32, #tpu.memory_space<vmem>>) target_semaphore(%119 : memref<!tpu.dma_semaphore, #tpu.memory_space<semaphore_mem>>)
      }
      %c2_i32_27 = arith.constant 2 : i32
    } else {
    }
    %c0_i32_4 = arith.constant 0 : i32
    %c0_i32_5 = arith.constant 0 : i32
    %8 = tpu.memref_slice %arg3[%c0_i32_4, %c0_i32_5] : memref<64x128xf32, #tpu.memory_space<any>> -> memref<16x128xf32, #tpu.memory_space<any>>
    %c0_i32_6 = arith.constant 0 : i32
    %c0_i32_7 = arith.constant 0 : i32
    %9 = tpu.memref_slice %arg9[%0, %c0_i32_6, %c0_i32_7] : memref<2x16x128xf32, #tpu.memory_space<vmem>> -> memref<1x16x128xf32, #tpu.memory_space<vmem>>
    %10 = tpu.memref_squeeze %9 : memref<1x16x128xf32, #tpu.memory_space<vmem>> -> memref<16x128xf32, #tpu.memory_space<vmem>>
    %11 = tpu.memref_slice %arg10[%0] : memref<2x!tpu.dma_semaphore, #tpu.memory_space<semaphore_mem>> -> memref<1x!tpu.dma_semaphore, #tpu.memory_space<semaphore_mem>>
    %12 = tpu.memref_squeeze %11 : memref<1x!tpu.dma_semaphore, #tpu.memory_space<semaphore_mem>> -> memref<!tpu.dma_semaphore, #tpu.memory_space<semaphore_mem>>
    tpu.wait_dma2 semaphore(%12 : memref<!tpu.dma_semaphore, #tpu.memory_space<semaphore_mem>>) src(%8 : memref<16x128xf32, #tpu.memory_space<any>>) dst(%10 : memref<16x128xf32, #tpu.memory_space<vmem>>)
    %13 = arith.index_cast %0 : i32 to index
    %c0 = arith.constant 0 : index
    %c0_8 = arith.constant 0 : index
    %14 = vector.load %arg9[%13, %c0, %c0_8] : memref<2x16x128xf32, #tpu.memory_space<vmem>>, vector<1x16x128xf32>
    %15 = vector.shape_cast %14 : vector<1x16x128xf32> to vector<16x128xf32>
    %16 = arith.truncf %15 : vector<16x128xf32> to vector<16x128xbf16>
    %c0_9 = arith.constant 0 : index
    %c0_10 = arith.constant 0 : index
    %17 = vector.load %arg4[%c0_9, %c0_10] : memref<128x128xbf16, #tpu.memory_space<vmem>>, vector<128x128xbf16>
    %cst = arith.constant dense<0.000000e+00> : vector<16x128xf32>
    %18 = tpu.matmul %16, %17, %cst {dimension_numbers = #tpu.dot_dimension_numbers<[1], [0], [0], [1], [0, 0, 1, 1], [], []>} : vector<16x128xbf16>, vector<128x128xbf16>, vector<16x128xf32> -> vector<16x128xf32>
    %c0_11 = arith.constant 0 : index
    %c0_12 = arith.constant 0 : index
    %19 = vector.load %arg5[%c0_11, %c0_12] : memref<1x128xf32, #tpu.memory_space<vmem>>, vector<1x128xf32>
    %20 = vector.broadcast %19 : vector<1x128xf32> to vector<16x128xf32>
    %21 = arith.addf %18, %20 : vector<16x128xf32>
    %cst_13 = arith.constant 0.000000e+00 : f32
    %22 = vector.broadcast %cst_13 : f32 to vector<16x128xf32>
    %23 = arith.maximumf %21, %22 : vector<16x128xf32>
    %24 = arith.truncf %23 : vector<16x128xf32> to vector<16x128xbf16>
    %c0_14 = arith.constant 0 : index
    %c0_15 = arith.constant 0 : index
    %25 = vector.load %arg6[%c0_14, %c0_15] : memref<128x128xbf16, #tpu.memory_space<vmem>>, vector<128x128xbf16>
    %cst_16 = arith.constant dense<0.000000e+00> : vector<16x128xf32>
    %26 = tpu.matmul %24, %25, %cst_16 {dimension_numbers = #tpu.dot_dimension_numbers<[1], [0], [0], [1], [0, 0, 1, 1], [], []>} : vector<16x128xbf16>, vector<128x128xbf16>, vector<16x128xf32> -> vector<16x128xf32>
    %c0_17 = arith.constant 0 : index
    %c0_18 = arith.constant 0 : index
    %27 = vector.load %arg7[%c0_17, %c0_18] : memref<1x128xf32, #tpu.memory_space<vmem>>, vector<1x128xf32>
    %28 = vector.broadcast %27 : vector<1x128xf32> to vector<16x128xf32>
    %29 = arith.addf %26, %28 : vector<16x128xf32>
    %c0_19 = arith.constant 0 : index
    %c0_20 = arith.constant 0 : index
    %30 = vector.load %arg8[%c0_19, %c0_20] : memref<16x128xf32, #tpu.memory_space<vmem>>, vector<16x128xf32>
    tpu.vector_store %arg8[%c0_19, %c0_20], %29 {strides = array<i32>} : memref<16x128xf32, #tpu.memory_space<vmem>>, vector<16x128xf32>,
    return
  }
  func.func @transform_1(%arg0: i32, %arg1: i32, %arg2: memref<16xi32, #tpu.memory_space<smem>>) -> (i32, i32) {
    %c0_i32 = arith.constant 0 : i32
    %c0_i32_0 = arith.constant 0 : i32
    %c0_i32_1 = arith.constant 0 : i32
    return %c0_i32, %c0_i32_0 : i32, i32
  }
  func.func @transform_2(%arg0: i32, %arg1: i32, %arg2: memref<16xi32, #tpu.memory_space<smem>>) -> (i32, i32) {
    %c0_i32 = arith.constant 0 : i32
    %c0_i32_0 = arith.constant 0 : i32
    %c0_i32_1 = arith.constant 0 : i32
    return %c0_i32, %c0_i32_0 : i32, i32
  }
  func.func @transform_3(%arg0: i32, %arg1: i32, %arg2: memref<16xi32, #tpu.memory_space<smem>>) -> (i32, i32) {
    %c0_i32 = arith.constant 0 : i32
    %c0_i32_0 = arith.constant 0 : i32
    %c0_i32_1 = arith.constant 0 : i32
    return %c0_i32, %c0_i32_0 : i32, i32
  }
  func.func @transform_4(%arg0: i32, %arg1: i32, %arg2: memref<16xi32, #tpu.memory_space<smem>>) -> (i32, i32) {
    %c0_i32 = arith.constant 0 : i32
    %c0_i32_0 = arith.constant 0 : i32
    %c0_i32_1 = arith.constant 0 : i32
    return %c0_i32, %c0_i32_0 : i32, i32
  }
  func.func @transform_5(%arg0: i32, %arg1: i32, %arg2: memref<16xi32, #tpu.memory_space<smem>>) -> (i32, i32) {
    %c1_i32 = arith.constant 1 : i32
    %0 = arith.muli %arg0, %c1_i32 : i32
    %1 = arith.addi %0, %arg1 : i32
    %c0_i32 = arith.constant 0 : i32
    %c0_i32_0 = arith.constant 0 : i32
    return %1, %c0_i32 : i32, i32
  }
}

</mosaic_0001>

<bundles_post_ra>
// kernel: text_encoder_forward.1
= control target key start
LH: loop header
LB: loop body
LE: loop exit
PB: predicated region body
PF: predicated region fallthrough
CT: control target
= control target key end

     0   :  { %s1389_s0 = inlined_call_operand.vmem [shape: s32[16], index: 0, kind: input, shape index: {}]   ;;  %s1390_s1 = inlined_call_operand.hbm [shape: f32[64,128], index: 1, kind: input, shape index: {}]   ;;  %s1391_s2 = inlined_call_operand.hbm [shape: bf16[128,128], index: 2, kind: input, shape index: {}]   ;;  %s1392_s3 = inlined_call_operand.vmem [shape: f32[1,128], index: 3, kind: input, shape index: {}]   ;;  %s1393_s4 = inlined_call_operand.hbm [shape: bf16[128,128], index: 4, kind: input, shape index: {}]   ;;  %s1394_s5 = inlined_call_operand.vmem [shape: f32[1,128], index: 5, kind: input, shape index: {}]   ;;  %s1395_s6 = inlined_call_operand.vmem [shape: f32[16,128], index: 6, kind: output, shape index: {}]  }
   0x1   :  { %s11_s23 = sshll.u32 %s1389_s0, 4  ;;  %s12_s23 = int_to_ptr.vmem [resolvable:$true] %s11_s23 }
   0x2   :  { %s936_s24 = scalar_lea.vmem %s12_s23, 16  ;;  %p941_p1 = scmp.lt.s32.totalorder %s12_s23, %s12_s23 }
   0x3   :  { %p937_p0 = scmp.ne.s32.totalorder %s12_s23, %s936_s24  ;;  %p942_p2 = scmp.lt.s32.totalorder %s936_s24, %s936_s24 }
   0x5   :  { %p943_p3 = por %p942_p2, %p941_p1 }
   0x7   :  { %p944_p4 = pnand %p943_p3, %p937_p0 }
   0x9   :  { %947 = shalt.err (!%p944_p4)  }
   0xa   :  { %s1180_s25 = smov [#allocation5]  }
   0xb   :  { %14 = dma.vmem_to_smem %s12_s23, 16, %s1180_s25, [#allocation4] }
   0xc   :  { %1168 = dma.done.wait [#allocation4], 16 }
   0xd   :  { %1169 = vsyncadd [#allocation4], 4294967280 }
   0xe   :  { %16 = sfence }
   0xf   :  { %17 = vsyncpa [#allocation7], 0 }
  0x10   :  { %18 = vsyncpa [#allocation9], 0  ;;  %s1181_s26 = smov [#allocation6]  }
  0x11   :  { %s24_s27 = sshll.u32 %s1181_s26, 4  ;;  %s25_s27 = int_to_ptr.vmem [resolvable:$true] %s24_s27 }
  0x12   :  { %s956_s28 = scalar_lea.vmem %s25_s27, 1024  ;;  %p961_p6 = scmp.lt.s32.totalorder %s25_s27, %s25_s27 }
  0x13   :  { %p957_p5 = scmp.ne.s32.totalorder %s25_s27, %s956_s28  ;;  %p962_p7 = scmp.lt.s32.totalorder %s956_s28, %s956_s28 }
  0x15   :  { %p963_p8 = por %p962_p7, %p961_p6 }
  0x17   :  { %p964_p9 = pnand %p963_p8, %p957_p5 }
  0x19   :  { %967 = shalt.err (!%p964_p9)
}
  0x1a   :  { %s1182_s0 = smov 64   ;;  %s1183_s29 = smov 4  }
  0x1b   :  { %30 = dma.hbm_to_vmem [thread:$0]  %s1391_s2, 1024, %s25_s27, [#allocation7], %s1182_s0, %s1182_s0, %s1183_s29  }
  0x1c   :  { %s1184_s8 = smov [#allocation8]  }
  0x1d   :  { %s38_s9 = sshll.u32 %s1184_s8, 4  ;;  %s39_s9 = int_to_ptr.vmem [resolvable:$true] %s38_s9 }
  0x1e   :  { %s976_s10 = scalar_lea.vmem %s39_s9, 1024  ;;  %p981_p11 = scmp.lt.s32.totalorder %s39_s9, %s39_s9 }
  0x1f   :  { %p977_p10 = scmp.ne.s32.totalorder %s39_s9, %s976_s10  ;;  %p982_p12 = scmp.lt.s32.totalorder %s976_s10, %s976_s10 }
  0x21   :  { %p983_p13 = por %p982_p12, %p981_p11 }
  0x23   :  { %p984_p0 = pnand %p983_p13, %p977_p10 }
  0x25   :  { %987 = shalt.err (!%p984_p0)
}
  0x26   :  { %44 = dma.hbm_to_vmem [thread:$0]  %s1393_s4, 1024, %s39_s9, [#allocation9], %s1182_s0, %s1182_s0, %s1183_s29  }
  0x27   :  { %1170 = dma.done.wait [#allocation7], 1024  }
  0x28   :  { %1171 = vsyncadd [#allocation7], 4294966272 }
  0x29   :  { %1172 = dma.done.wait [#allocation9], 1024  }
  0x2a   :  { %1173 = vsyncadd [#allocation9], 4294966272  ;;  %s1232_s13 = smov 0  }
  0x2b LB: > { %s1238_s2 = sshll.u32 %s1178_s13, 3  ;;  %s1265_s30 = scalar_lea.hbm %s1390_s1, 1024  ;;  %s1178_s13 = sphi %s1232_s13, %s79_s13  }
  0x2c   : > { %s82_s14 = sld [smem:[#allocation5 + %s1238_s2]]  ;;  %s1242_s4 = scalar_lea.vmem [#allocation2], %s1238_s2 }
  0x2d   : > { %s93_s15 = sshll.u32 %s1242_s4, 4  ;;  %s97_s16 = sadd.s32 1, %s1238_s2  ;;  %s1246_s15 = int_to_ptr.vmem [resolvable:$true] %s93_s15 }
  0x2e   : > { %s1248_s17 = sld [smem:[#allocation5 + %s97_s16]]  ;;  %s660_s18 = scalar_lea.vmem %s1242_s4, 1 [#allocation2] }
  0x2f   : > { %s114_s19 = sadd.s32 2, %s1238_s2  ;;  %s110_s20 = sshll.u32 %s660_s18, 4  ;;  %s1254_s20 = int_to_ptr.vmem [resolvable:$true] %s110_s20 }
  0x30   : > { %s1252_s21 = sld [smem:[#allocation5 + %s114_s19]]  ;;  %s665_s22 = scalar_lea.vmem %s1242_s4, 2 [#allocation2] }
  0x31   : > { %s127_s24 = sshll.u32 %s665_s22, 4  ;;  %s1260_s24 = int_to_ptr.vmem [resolvable:$true] %s127_s24 }
  0x32   : > { %s765_s23 = sshll.u32 %s82_s14, 4 }
  0x33   : > { %s84_s27 = scalar_lea.hbm %s1390_s1, %s765_s23 }
  0x34   : > { %s988_s28 = scalar_lea.hbm %s84_s27, 16  ;;  %p991_p2 = scmp.lt.s32.totalorder %s84_s27, %s1390_s1 }
  0x35   : > { %p989_p1 = scmp.ne.s32.totalorder %s84_s27, %s988_s28  ;;  %p992_p3 = scmp.lt.s32.totalorder %s1265_s30, %s988_s28 }
  0x37   : > { %p993_p4 = por %p992_p3, %p991_p2 }
  0x39   : > { %p994_p5 = pnand %p993_p4, %p989_p1 }
  0x3b   : > { %997 = shalt.err (!%p994_p5)  }
  0x3c   : > { %s998_s9 = scalar_lea.vmem %s1246_s15, 16  ;;  %s1185_s10 = smov [#allocation2]  }
  0x3d   : > { %p999_p6 = scmp.ne.s32.totalorder %s1246_s15, %s998_s9  ;;  %s1000_s11 = sshll.u32 %s1185_s10, 4  ;;  %s1273_s11 = int_to_ptr.vmem [resolvable:$false] %s1000_s11 }
  0x3e   : > { %s1276_s12 = scalar_lea.vmem %s1273_s11, 512  ;;  %p1003_p7 = scmp.lt.s32.totalorder %s1246_s15, %s1273_s11 }
  0x3f   : > { %p1004_p8 = scmp.lt.s32.totalorder %s1276_s12, %s998_s9 }
  0x41   : > { %p1005_p9 = por %p1004_p8, %p1003_p7 }
  0x43   : > { %p1006_p10 = pnand %p1005_p9, %p999_p6 }
  0x45   : > { %1009 = shalt.err (!%p1006_p10)  }
  0x46   : > { %96 = dma.hbm_to_vmem [thread:$0]  %s84_s27, 16, %s1246_s15, [#allocation3] }
  0x47   : > { %s766_s14 = sshll.u32 %s1248_s17, 4  ;;  %s131_s16 = sadd.s32 3, %s1238_s2 }
  0x48   : > { %s101_s22 = scalar_lea.hbm %s1390_s1, %s766_s14  ;;  %s768_s23 = sshll.u32 %s1252_s21, 4 }
  0x49   : > { %s1010_s25 = scalar_lea.hbm %s101_s22, 16  ;;  %p1013_p12 = scmp.lt.s32.totalorder %s101_s22, %s1390_s1 }
  0x4a   : > { %p1011_p11 = scmp.ne.s32.totalorder %s101_s22, %s1010_s25  ;;  %p1014_p13 = scmp.lt.s32.totalorder %s1265_s30, %s1010_s25 }
  0x4c   : > { %p1015_p0 = por %p1014_p13, %p1013_p12 }
  0x4e   : > { %p1016_p1 = pnand %p1015_p0, %p1011_p11 }
  0x50   : > { %1019 = shalt.err (!%p1016_p1)  }
  0x51   : > { %s1020_s15 = scalar_lea.vmem %s1254_s20, 16  ;;  %p1025_p3 = scmp.lt.s32.totalorder %s1254_s20, %s1273_s11 }
  0x52   : > { %p1021_p2 = scmp.ne.s32.totalorder %s1254_s20, %s1020_s15  ;;  %p1026_p4 = scmp.lt.s32.totalorder %s1276_s12, %s1020_s15 }
  0x54   : > { %p1027_p5 = por %p1026_p4, %p1025_p3 }
  0x56   : > { %p1028_p6 = pnand %p1027_p5, %p1021_p2 }
  0x58   : > { %1031 = shalt.err (!%p1028_p6)  }
  0x59   : > { %113 = dma.hbm_to_vmem [thread:$0]  %s101_s22, 16, %s1254_s20, [#allocation3] }
  0x5a   : > { %s118_s27 = scalar_lea.hbm %s1390_s1, %s768_s23  ;;  %s133_s0 = sld [smem:[#allocation5 + %s131_s16]] }
  0x5b   : > { %s1032_s29 = scalar_lea.hbm %s118_s27, 16  ;;  %p1035_p8 = scmp.lt.s32.totalorder %s118_s27, %s1390_s1 }
  0x5c   : > { %p1033_p7 = scmp.ne.s32.totalorder %s118_s27, %s1032_s29  ;;  %p1036_p9 = scmp.lt.s32.totalorder %s1265_s30, %s1032_s29 }
  0x5e   : > { %p1037_p10 = por %p1036_p9, %p1035_p8 }
  0x60   : > { %p1038_p11 = pnand %p1037_p10, %p1033_p7 }
  0x62   : > { %1041 = shalt.err (!%p1038_p11)  }
  0x63   : > { %s1042_s20 = scalar_lea.vmem %s1260_s24, 16  ;;  %p1047_p13 = scmp.lt.s32.totalorder %s1260_s24, %s1273_s11 }
  0x64   : > { %p1043_p12 = scmp.ne.s32.totalorder %s1260_s24, %s1042_s20  ;;  %p1048_p0 = scmp.lt.s32.totalorder %s1276_s12, %s1042_s20 }
  0x66   : > { %p1049_p1 = por %p1048_p0, %p1047_p13 }
  0x68   : > { %p1050_p2 = pnand %p1049_p1, %p1043_p12 }
  0x6a   : > { %1053 = shalt.err (!%p1050_p2)  }
  0x6b   : > { %130 = dma.hbm_to_vmem [thread:$0]  %s118_s27, 16, %s1260_s24, [#allocation3] }
  0x6c   : > { %s670_s9 = scalar_lea.vmem %s1242_s4, 3 [#allocation2]  ;;  %s148_s10 = sadd.s32 4, %s1238_s2 }
  0x6d   : > { %s144_s14 = sshll.u32 %s670_s9, 4  ;;  %s150_s16 = sld [smem:[#allocation5 + %s148_s10]]  ;;  %s145_s14 = int_to_ptr.vmem [resolvable:$true] %s144_s14 }
  0x6e   : > { %s675_s18 = scalar_lea.vmem %s1242_s4, 4 [#allocation2]  ;;  %s165_s22 = sadd.s32 5, %s1238_s2 }
  0x6f   : > { %s161_s19 = sshll.u32 %s675_s18, 4  ;;  %s770_s23 = sshll.u32 %s133_s0, 4  ;;  %s1315_s19 = int_to_ptr.vmem [resolvable:$true] %s161_s19 }
  0x70   : > { %s135_s28 = scalar_lea.hbm %s1390_s1, %s770_s23  ;;  %s1320_s15 = sld [smem:[#allocation5 + %s165_s22]] }
  0x71   : > { %s1054_s17 = scalar_lea.hbm %s135_s28, 16  ;;  %p1057_p4 = scmp.lt.s32.totalorder %s135_s28, %s1390_s1 }
  0x72   : > { %p1055_p3 = scmp.ne.s32.totalorder %s135_s28, %s1054_s17  ;;  %p1058_p5 = scmp.lt.s32.totalorder %s1265_s30, %s1054_s17 }
  0x74   : > { %p1059_p6 = por %p1058_p5, %p1057_p4 }
  0x76   : > { %p1060_p7 = pnand %p1059_p6, %p1055_p3 }
  0x78   : > { %1063 = shalt.err (!%p1060_p7)  }
  0x79   : > { %s1064_s27 = scalar_lea.vmem %s145_s14, 16  ;;  %p1069_p9 = scmp.lt.s32.totalorder %s145_s14, %s1273_s11 }
  0x7a   : > { %p1065_p8 = scmp.ne.s32.totalorder %s145_s14, %s1064_s27  ;;  %p1070_p10 = scmp.lt.s32.totalorder %s1276_s12, %s1064_s27 }
  0x7c   : > { %p1071_p11 = por %p1070_p10, %p1069_p9 }
  0x7e   : > { %p1072_p12 = pnand %p1071_p11, %p1065_p8 }
  0x80   : > { %1075 = shalt.err (!%p1072_p12)  }
  0x81   : > { %147 = dma.hbm_to_vmem [thread:$0]  %s135_s28, 16, %s145_s14, [#allocation3] }
  0x82   : > { %s772_s0 = sshll.u32 %s150_s16, 4  ;;  %s680_s29 = scalar_lea.vmem %s1242_s4, 5 [#allocation2] }
  0x83   : > { %s152_s20 = scalar_lea.hbm %s1390_s1, %s772_s0  ;;  %s178_s9 = sshll.u32 %s680_s29, 4  ;;  %s179_s9 = int_to_ptr.vmem [resolvable:$true] %s178_s9 }
  0x84   : > { %s1076_s10 = scalar_lea.hbm %s152_s20, 16  ;;  %p1079_p0 = scmp.lt.s32.totalorder %s152_s20, %s1390_s1 }
  0x85   : > { %p1077_p13 = scmp.ne.s32.totalorder %s152_s20, %s1076_s10  ;;  %p1080_p1 = scmp.lt.s32.totalorder %s1265_s30, %s1076_s10 }
  0x87   : > { %p1081_p2 = por %p1080_p1, %p1079_p0 }
  0x89   : > { %p1082_p3 = pnand %p1081_p2, %p1077_p13 }
  0x8b   : > { %1085 = shalt.err (!%p1082_p3)  }
  0x8c   : > { %s1086_s14 = scalar_lea.vmem %s1315_s19, 16  ;;  %p1091_p5 = scmp.lt.s32.totalorder %s1315_s19, %s1273_s11 }
  0x8d   : > { %p1087_p4 = scmp.ne.s32.totalorder %s1315_s19, %s1086_s14  ;;  %p1092_p6 = scmp.lt.s32.totalorder %s1276_s12, %s1086_s14 }
  0x8f   : > { %p1093_p7 = por %p1092_p6, %p1091_p5 }
  0x91   : > { %p1094_p8 = pnand %p1093_p7, %p1087_p4 }
  0x93   : > { %1097 = shalt.err (!%p1094_p8)  }
  0x94   : > { %164 = dma.hbm_to_vmem [thread:$0]  %s152_s20, 16, %s1315_s19, [#allocation3] }
  0x95   : > { %s182_s16 = sadd.s32 6, %s1238_s2  ;;  %s774_s23 = sshll.u32 %s1320_s15, 4 }
  0x96   : > { %s184_s25 = sld [smem:[#allocation5 + %s182_s16]]  ;;  %s169_s17 = scalar_lea.hbm %s1390_s1, %s774_s23 }
  0x97   : > { %s685_s24 = scalar_lea.vmem %s1242_s4, 6 [#allocation2]  ;;  %s1098_s21 = scalar_lea.hbm %s169_s17, 16 }
  0x98   : > { %p1099_p9 = scmp.ne.s32.totalorder %s169_s17, %s1098_s21  ;;  %p1101_p10 = scmp.lt.s32.totalorder %s169_s17, %s1390_s1 }
  0x99   : > { %p1102_p11 = scmp.lt.s32.totalorder %s1265_s30, %s1098_s21 }
  0x9b   : > { %p1103_p12 = por %p1102_p11, %p1101_p10 }
  0x9d   : > { %p1104_p13 = pnand %p1103_p12, %p1099_p9 }
  0x9f   : > { %1107 = shalt.err (!%p1104_p13)  }
  0xa0   : > { %s1108_s19 = scalar_lea.vmem %s179_s9, 16  ;;  %p1113_p1 = scmp.lt.s32.totalorder %s179_s9, %s1273_s11 }
  0xa1   : > { %p1109_p0 = scmp.ne.s32.totalorder %s179_s9, %s1108_s19  ;;  %p1114_p2 = scmp.lt.s32.totalorder %s1276_s12, %s1108_s19 }
  0xa3   : > { %p1115_p3 = por %p1114_p2, %p1113_p1 }
  0xa5   : > { %p1116_p4 = pnand %p1115_p3, %p1109_p0 }
  0xa7   : > { %1119 = shalt.err (!%p1116_p4)  }
  0xa8   : > { %181 = dma.hbm_to_vmem [thread:$0]  %s169_s17, 16, %s179_s9, [#allocation3] }
  0xa9   : > { %s195_s15 = sshll.u32 %s685_s24, 4  ;;  %s199_s29 = sadd.s32 7, %s1238_s2  ;;  %s196_s15 = int_to_ptr.vmem [resolvable:$true] %s195_s15 }
  0xaa   : > { %s201_s7 = sld [smem:[#allocation5 + %s199_s29]]  ;;  %s690_s8 = scalar_lea.vmem %s1242_s4, 7 [#allocation2] }
  0xab   : > { %s776_s20 = sshll.u32 %s184_s25, 4  ;;  %s212_s10 = sshll.u32 %s690_s8, 4  ;;  %s213_s10 = int_to_ptr.vmem [resolvable:$true] %s212_s10 }
  0xac   : > { %s186_s14 = scalar_lea.hbm %s1390_s1, %s776_s20 }
  0xad   : > { %s1120_s16 = scalar_lea.hbm %s186_s14, 16  ;;  %p1123_p6 = scmp.lt.s32.totalorder %s186_s14, %s1390_s1 }
  0xae   : > { %p1121_p5 = scmp.ne.s32.totalorder %s186_s14, %s1120_s16  ;;  %p1124_p7 = scmp.lt.s32.totalorder %s1265_s30, %s1120_s16 }
  0xb0   : > { %p1125_p8 = por %p1124_p7, %p1123_p6 }
  0xb2   : > { %p1126_p9 = pnand %p1125_p8, %p1121_p5 }
  0xb4   : > { %1129 = shalt.err (!%p1126_p9)  }
  0xb5   : > { %s1130_s2 = scalar_lea.vmem %s196_s15, 16  ;;  %p1135_p11 = scmp.lt.s32.totalorder %s196_s15, %s1273_s11 }
  0xb6   : > { %p1131_p10 = scmp.ne.s32.totalorder %s196_s15, %s1130_s2  ;;  %p1136_p12 = scmp.lt.s32.totalorder %s1276_s12, %s1130_s2 }
  0xb8   : > { %p1137_p13 = por %p1136_p12, %p1135_p11 }
  0xba   : > { %p1138_p0 = pnand %p1137_p13, %p1131_p10 }
  0xbc   : > { %1141 = shalt.err (!%p1138_p0)  }
  0xbd   : > { %198 = dma.hbm_to_vmem [thread:$0]  %s186_s14, 16, %s196_s15, [#allocation3] }
  0xbe   : > { %s778_s4 = sshll.u32 %s201_s7, 4 }
  0xbf   : > { %s203_s28 = scalar_lea.hbm %s1390_s1, %s778_s4 }
  0xc0   : > { %s1142_s17 = scalar_lea.hbm %s203_s28, 16  ;;  %p1145_p2 = scmp.lt.s32.totalorder %s203_s28, %s1390_s1 }
  0xc1   : > { %p1143_p1 = scmp.ne.s32.totalorder %s203_s28, %s1142_s17  ;;  %p1146_p3 = scmp.lt.s32.totalorder %s1265_s30, %s1142_s17 }
  0xc3   : > { %p1147_p4 = por %p1146_p3, %p1145_p2 }
  0xc5   : > { %p1148_p5 = pnand %p1147_p4, %p1143_p1 }
  0xc7   : > { %1151 = shalt.err (!%p1148_p5)  }
  0xc8   : > { %s1152_s27 = scalar_lea.vmem %s213_s10, 16  ;;  %p1157_p7 = scmp.lt.s32.totalorder %s213_s10, %s1273_s11 }
  0xc9   : > { %p1153_p6 = scmp.ne.s32.totalorder %s213_s10, %s1152_s27  ;;  %p1158_p8 = scmp.lt.s32.totalorder %s1276_s12, %s1152_s27 }
  0xcb   : > { %p1159_p9 = por %p1158_p8, %p1157_p7 }
  0xcd   : > { %p1160_p10 = pnand %p1159_p9, %p1153_p6 }
  0xcf   : > { %1163 = shalt.err (!%p1160_p10)  }
  0xd0   : > { %215 = dma.hbm_to_vmem [thread:$0]  %s203_s28, 16, %s213_s10, [#allocation3] }
  0xd1   : > { %s79_s13 = sadd.s32 1, %s1178_s13  }
  0xd2   : > { %p76_p11 = scmp.ge.s32.totalorder %s79_s13, 2  }
  0xd4   :  { %78 = sbr.rel (!%p76_p11) target bundleno = 43 (0x2b), region = 170 }
  0xd9   :  { %1174 = dma.done.wait [#allocation3], 256 }
  0xda   :  { %1175 = vsyncadd [#allocation3], 4294967040  ;;  %v1186_v0 = vmov 0.0   ;;  %vm1187_vm0 = vmmov 0   ;;  %v920_v1 = vld [vmem:[#allocation6 + $0x38] sm:$0xff]   ;;  %v921_v2 = vld [vmem:[#allocation6 + $0x30] sm:$0xff]  }
  0xdb   :  { %865 = vmatprep.subr.bf16.mxu0 %v1186_v0  ;;  %881 = vmatprep.mubr.msk.bf16.mxu0 %vm1187_vm0, %v1186_v0  ;;  %v922_v3 = vld [vmem:[#allocation6 + $0x28] sm:$0xff]   ;;  %v928_v4 = vld [vmem:[#allocation8 + $0x38] sm:$0xff]   ;;  %v923_v5 = vld [vmem:[#allocation6 + $0x20] sm:$0xff]  }
  0xdc   :  { %885 = vmatprep.subr.bf16.mxu1 %v1186_v0  ;;  %901 = vmatprep.mubr.msk.bf16.mxu1 %vm1187_vm0, %v1186_v0  ;;  %v929_v6 = vld [vmem:[#allocation8 + $0x30] sm:$0xff]   ;;  %v924_v7 = vld [vmem:[#allocation6 + $0x18] sm:$0xff]   ;;  %v930_v8 = vld [vmem:[#allocation8 + $0x28] sm:$0xff]  }
  0xdd   :  { %866 = vmatpush3.bf16.msra.mxu0 %v920_v1  ;;  %886 = vmatpush3.bf16.msra.mxu1 %v928_v4  ;;  %v925_v9 = vld [vmem:[#allocation6 + $0x10] sm:$0xff]   ;;  %v931_v10 = vld [vmem:[#allocation8 + $0x20] sm:$0xff]   ;;  %v926_v11 = vld [vmem:[#allocation6 + $0x8] sm:$0xff]  }
  0xde   :  { %867 = vmatprep.subr.bf16.mxu0 %v1186_v0  ;;  %887 = vmatprep.subr.bf16.mxu1 %v1186_v0  ;;  %v932_v12 = vld [vmem:[#allocation8 + $0x18] sm:$0xff]   ;;  %v927_v13 = vld [vmem:[#allocation6] sm:$0xff]   ;;  %v384_v15 = vld [vmem:[#allocation2 + $0x8] sm:$0xff] }
  0xdf   :  { %v383_v14 = vld [vmem:[#allocation2] sm:$0xff]  ;;  %v933_v17 = vld [vmem:[#allocation8 + $0x10] sm:$0xff]   ;;  %v934_v18 = vld [vmem:[#allocation8 + $0x8] sm:$0xff]  }
  0xe0   :  { %v385_v16 = vpack.c.bf16 %v384_v15, %v383_v14  ;;  %v935_v19 = vld [vmem:[#allocation8] sm:$0xff]  }
  0xe1   :  { %868 = vmatpush3.bf16.msra.mxu0 %v921_v2  ;;  %888 = vmatpush3.bf16.msra.mxu1 %v929_v6  ;;  %v804_v20 = vld [vmem:[%s1392_s3] ss:$0 sm:$0xff] }
  0xe2   :  { %869 = vmatprep.subr.bf16.mxu0 %v1186_v0  ;;  %889 = vmatprep.subr.bf16.mxu1 %v1186_v0  ;;  %v813_v30 = vld [vmem:[%s1394_s5] ss:$0 sm:$0xff] }
  0xe5   :  { %870 = vmatpush3.bf16.msra.mxu0 %v922_v3  ;;  %890 = vmatpush3.bf16.msra.mxu1 %v930_v8 }
  0xe6   :  { %871 = vmatprep.subr.bf16.mxu0 %v1186_v0  ;;  %891 = vmatprep.subr.bf16.mxu1 %v1186_v0 }
  0xe9   :  { %872 = vmatpush3.bf16.msra.mxu0 %v923_v5  ;;  %892 = vmatpush3.bf16.msra.mxu1 %v931_v10 }
  0xea   :  { %873 = vmatprep.subr.bf16.mxu0 %v1186_v0  ;;  %893 = vmatprep.subr.bf16.mxu1 %v1186_v0 }
  0xed   :  { %874 = vmatpush3.bf16.msra.mxu0 %v924_v7  ;;  %894 = vmatpush3.bf16.msra.mxu1 %v932_v12 }
  0xee   :  { %875 = vmatprep.subr.bf16.mxu0 %v1186_v0  ;;  %895 = vmatprep.subr.bf16.mxu1 %v1186_v0 }
  0xf1   :  { %876 = vmatpush3.bf16.msra.mxu0 %v925_v9  ;;  %896 = vmatpush3.bf16.msra.mxu1 %v933_v17 }
  0xf2   :  { %877 = vmatprep.subr.bf16.mxu0 %v1186_v0  ;;  %897 = vmatprep.subr.bf16.mxu1 %v1186_v0 }
  0xf5   :  { %878 = vmatpush3.bf16.msra.mxu0 %v926_v11  ;;  %898 = vmatpush3.bf16.msra.mxu1 %v934_v18 }
  0xf6   :  { %879 = vmatprep.subr.bf16.mxu0 %v1186_v0  ;;  %899 = vmatprep.subr.bf16.mxu1 %v1186_v0 }
  0xf9   :  { %880 = vmatpush3.bf16.msra.mxu0 %v927_v13  ;;  %900 = vmatpush3.bf16.msra.mxu1 %v935_v19 }
  0xfc   :  { %882 = vmatmul.mubr.bf16.vlgmr.msra.gmra.mxu0 %v385_v16 }
 0x1bc   :  { %v491_v21 = vpop.f32.mrf.mxu0 }
 0x1bd   :  { %v492_v23 = vadd.f32 %v804_v20, %v491_v21 }
 0x1be   :  { %v883_v22 = vpop.f32.mrf.mxu0 }
 0x1bf   :  { %v498_v27 = vmax.f32 %v492_v23, 0.0 }
 0x1c0   :  { %v494_v24 = vpop.f32.mrf.mxu0 }
 0x1c1   :  { %v495_v25 = vadd.f32 %v804_v20, %v494_v24 }
 0x1c2   :  { %v884_v26 = vpop.f32.mrf.mxu0 }
 0x1c3   :  { %v499_v28 = vmax.f32 %v495_v25, 0.0 }
 0x1c5   :  { %v500_v29 = vpack.c.bf16 %v499_v28, %v498_v27 }
 0x1c7   :  { %902 = vmatmul.mubr.bf16.vlgmr.msra.gmra.mxu1 %v500_v29 }
 0x287   :  { %v606_v31 = vpop.f32.mrf.mxu1 }
 0x288   :  { %v607_v32 = vadd.f32 %v813_v30, %v606_v31 }
 0x289   :  { %v903_v33 = vpop.f32.mrf.mxu1 }
 0x28a   :  { %613 = vst [vmem:[%s1395_s6] sm:$0xff] %v607_v32 }
 0x28b   :  { %v609_v34 = vpop.f32.mrf.mxu1 }
 0x28c   :  { %v610_v35 = vadd.f32 %v813_v30, %v609_v34 }
 0x28d   :  { %v904_v36 = vpop.f32.mrf.mxu1 }
 0x28e   :  { %614 = vst [vmem:[%s1395_s6 + $0x8] sm:$0xff] %v610_v35 }
 0x28f   :  { %633 = vsyncpa [#allocation7], 1 }
 0x290   :  { %634 = vsyncpa [#allocation9], 1 }
 0x291   :  { %635 = vsyncmov [#allocation3] }
 0x294   :  { %s636_s15 = vpop.sfrf %635 }
 0x295   :  { %p822_p12 = scmp.ne.s32.totalorder %s636_s15, 0 }
 0x297   :  { %640 = shalt.err (%p822_p12)  }
 0x298   :  { %642 = vsyncmov [#allocation3 + $0x1] }
 0x29b   :  { %s643_s5 = vpop.sfrf %642 }
 0x29c   :  { %p823_p13 = scmp.ne.s32.totalorder %s643_s5, 0 }
 0x29e   :  { %647 = shalt.err (%p823_p13)  }

</bundles_post_ra>
